<compile_context>
chip_gen: v6e
topology: v6e:2x2x1
jax: 0.10.0
libtpu: 0.0.40
codegen_flags: <defaults>
</compile_context>

<pallas_src>
import functools

import jax
import jax.numpy as jnp
import numpy as np
from jax.experimental import pallas as pl
from jax.experimental.pallas import tpu as pltpu


# ----------------------------------------------------------------------------
# Pallas smoke-test kernel (tiled copy) — NOT a production identity path.
# ----------------------------------------------------------------------------
def _copy_kernel(x_ref, o_ref):
    # Whole-tile load/store; lane dim is a multiple of 128 (or full extent),
    # so the store lowers to unmasked, lane-dense vst.
    o_ref[...] = x_ref[...]


# Minimum second-minor (sublane) tile per element size: sub-32-bit dtypes pack
# along sublanes, so bf16 needs 16 rows and int8/fp8 need 32 rows per tile.
_MIN_SUBLANES = {1: 32, 2: 16, 4: 8, 8: 8}


def _largest_divisor_tile(n: int, unit: int, cap_units: int):
    """Largest t = k*unit with t | n and k <= cap_units, or None."""
    k = min(cap_units, n // unit)
    for kk in range(k, 0, -1):
        t = kk * unit
        if n % t == 0:
            return t
    return None


def _choose_tiles(rows: int, cols: int, itemsize: int, target_block_bytes: int):
    """Byte-budget, dtype-aware (row_tile, col_tile) selection.

    Keeps block bytes near `target_block_bytes` so the pipelined footprint
    (2x input blocks + 2x output blocks) stays far under every generation's
    scoped VMEM (16 MiB v5e / 32 MiB v6e / 32 MiB-of-64 v7x).
    """
    min_rows = _MIN_SUBLANES.get(itemsize, 8)

    # Lane (last-dim) tile: must be a multiple of 128 or the full extent.
    if cols % 128 == 0:
        lane_budget = max(128, min(cols, target_block_bytes // (min_rows * itemsize)))
        tc = _largest_divisor_tile(cols, 128, lane_budget // 128) or cols
    else:
        tc = cols  # full-extent lane dim is always legal (small cols here)

    # Sublane (second-minor) tile from the remaining byte budget.
    row_budget_units = max(1, target_block_bytes // (tc * itemsize * min_rows))
    if rows % min_rows == 0:
        tr = _largest_divisor_tile(rows, min_rows, row_budget_units) or min_rows
    else:
        # TODO(synk): pad ragged row counts to a multiple of min_rows outside
        #             the kernel for large arrays; full extent is fine at the
        #             small test scale used here.
        tr = rows
    return tr, tc


def pallas_copy_smoke_test(x: jax.Array, *, target_block_bytes: int = 4 << 20):
    """Tiled HBM->VMEM->HBM copy, used ONLY to smoke-test the Pallas pipeline.

    Do not treat its wall time as representative of any real workload — the
    production identity path is `identity(x)` below, which issues no kernel.
    """
    rows, cols = x.shape
    itemsize = x.dtype.itemsize
    tr, tc = _choose_tiles(rows, cols, itemsize, target_block_bytes)

    block_bytes = tr * tc * itemsize
    # 2x double-buffered input blocks + 2x output blocks, plus headroom;
    # clamp to 32 MiB (safe on v7x's 64 MiB physical, generous on v5e/v6e).
    vmem_limit = int(min(32 << 20, max(4 * block_bytes + (2 << 20), 4 << 20)))

    grid = (pl.cdiv(rows, tr), pl.cdiv(cols, tc))
    return pl.pallas_call(
        _copy_kernel,
        out_shape=jax.ShapeDtypeStruct((rows, cols), x.dtype),
        grid=grid,
        in_specs=[pl.BlockSpec((tr, tc), lambda i, j: (i, j))],
        out_specs=pl.BlockSpec((tr, tc), lambda i, j: (i, j)),
        compiler_params=pltpu.CompilerParams(
            # Both tile axes are independent: shard across v7x's 2 TensorCores
            # (measured-neutral on single-TC v5e/v6e).
            dimension_semantics=("parallel", "parallel"),
            vmem_limit_bytes=vmem_limit,
        ),
    )(x)


# ----------------------------------------------------------------------------
# Production identity path: no kernel, no HBM traffic.
# ----------------------------------------------------------------------------
def identity(x: jax.Array) -> jax.Array:
    """The production identity needs no pallas_call at all."""
    return x


# ----------------------------------------------------------------------------
# Faithful JAX-side equivalent of the PyTorch module.
# ----------------------------------------------------------------------------
class TopicAttentionLSTM:
    """JAX equivalent of models/tat_lstm.py::TopicAttentionLSTM.

    The reference module defines no parameters and its forward() is a no-op
    returning None.  That behaviour is reproduced exactly here.
    """

    def __init__(self, config=None):
        # Reference __init__ registers nothing.
        self.config = config

    def forward(self):
        # Reference forward() is `pass` -> returns None.
        return None

    __call__ = forward


if __name__ == "__main__":
    # 1) Exact-semantics forward of the module: no params, no inputs, None out.
    model = TopicAttentionLSTM(config=None)
    assert model.forward() is None, "Reference forward() must return None."

    key = jax.random.PRNGKey(0)
    k1, k2 = jax.random.split(key)

    # 2) f32 pipeline smoke test. Shape (2048, 256) with a 128 KiB block
    #    target -> (128, 256) blocks, grid=(16, 1): >= 8 steps per TensorCore
    #    on v7x so double-buffered prefetch/writeback actually engages.
    x32 = jax.random.normal(k1, (2048, 256), dtype=jnp.float32)
    copy_small_blocks = jax.jit(
        functools.partial(pallas_copy_smoke_test, target_block_bytes=128 * 1024)
    )
    y32 = jax.block_until_ready(copy_small_blocks(x32))
    assert y32.shape == x32.shape and y32.dtype == x32.dtype
    np.testing.assert_array_equal(np.asarray(y32), np.asarray(x32))

    # 3) bf16 pipeline smoke test: exercises the dtype-aware (16, 128) minimum
    #    sublane tile path.
    xbf = jax.random.normal(k2, (256, 384), dtype=jnp.bfloat16)
    ybf = jax.block_until_ready(copy_small_blocks(xbf))
    assert ybf.shape == xbf.shape and ybf.dtype == xbf.dtype
    np.testing.assert_array_equal(
        np.asarray(ybf.astype(jnp.float32)), np.asarray(xbf.astype(jnp.float32))
    )

    # 4) Production identity path: no kernel launched, same buffer returned.
    assert identity(x32) is x32

    print("KERNEL_OK")
</pallas_src>

<mosaic_0001>
module attributes {stable_mosaic.version = 11 : i64} {
  func.func @_copy_kernel(%arg0: i32, %arg1: i32, %arg2: memref<128x256xf32, #tpu.memory_space<vmem>>, %arg3: memref<128x256xf32, #tpu.memory_space<vmem>>) attributes {dimension_semantics = [#tpu.dimension_semantics<parallel>, #tpu.dimension_semantics<parallel>], iteration_bounds = array<i64: 16, 1>, scalar_prefetch = 0 : i64, scratch_operands = 0 : i64, tpu.core_type = #tpu.core_type<tc>, window_params = [{transform_indices = @transform_0, window_bounds = array<i64: 128, 256>}, {transform_indices = @transform_1, window_bounds = array<i64: 128, 256>}]} {
    %c0 = arith.constant 0 : index
    %c0_0 = arith.constant 0 : index
    %0 = vector.load %arg2[%c0, %c0_0] : memref<128x256xf32, #tpu.memory_space<vmem>>, vector<128x256xf32>
    %c0_1 = arith.constant 0 : index
    %c0_2 = arith.constant 0 : index
    %1 = vector.load %arg3[%c0_1, %c0_2] : memref<128x256xf32, #tpu.memory_space<vmem>>, vector<128x256xf32>
    tpu.vector_store %arg3[%c0_1, %c0_2], %0 {strides = array<i32>} : memref<128x256xf32, #tpu.memory_space<vmem>>, vector<128x256xf32>,
    return
  }
  func.func @transform_0(%arg0: i32, %arg1: i32) -> (i32, i32) {
    %c0_i32 = arith.constant 0 : i32
    return %arg0, %arg1 : i32, i32
  }
  func.func @transform_1(%arg0: i32, %arg1: i32) -> (i32, i32) {
    %c0_i32 = arith.constant 0 : i32
    return %arg0, %arg1 : i32, i32
  }
}

</mosaic_0001>

<bundles_post_ra>
// kernel: pallas_copy_smoke_test.1
= control target key start
LH: loop header
LB: loop body
LE: loop exit
PB: predicated region body
PF: predicated region fallthrough
CT: control target
= control target key end

     0   :  { %6 = vsyncpa [#allocation3], 0  ;;  %s752_s0 = inlined_call_operand.hbm [shape: f32[2048,256], index: 0, kind: input, shape index: {}]   ;;  %s753_s1 = inlined_call_operand.hbm [shape: f32[2048,256], index: 1, kind: output, shape index: {}]  }
   0x1   :  { %8 = vsyncpa [#allocation3 + $0x1], 0 }
   0x2   :  { %9 = vsyncpa [#allocation4], 0 }
   0x3   :  { %11 = vsyncpa [#allocation4 + $0x1], 0  ;;  %s539_s6 = smov 0   ;;  %s541_s7 = smov 0  }
   0x4   :  { %s543_s8 = smov 0   ;;  %s545_s9 = smov 0  }
   0x5   :  { %s547_s10 = smov 0   ;;  %s549_s11 = smov 0  }
   0x6 LB: > { %s326_s12 = sadd.s32 4294967295, %s521_s11   ;;  %s327_s13 = sadd.s32 4294967294, %s521_s11   ;;  %s521_s11 = sphi %s549_s11, %s17_s11   ;;  %s517_s10 = sphi %s547_s10, %s763_s10   ;;  %s513_s9 = sphi %s545_s9, %s762_s9   ;;  %s509_s8 = sphi %s543_s8, %s761_s8   ;;  %s505_s7 = sphi %s541_s7, %s760_s7   ;;  %s501_s6 = sphi %s539_s6, %s759_s6  }
   0x7   : > { %s29_s14 = sadd.s32 1, %s517_s10  ;;  %s38_s15 = sadd.s32 1, %s509_s8 }
   0x8   : > { %p31_p0 = scmp.ge.s32.totalorder %s29_s14, 16  ;;  %p45_p1 = scmp.ne.s32.totalorder %s509_s8, %s505_s7 }
   0x9   : > { %p46_p2 = scmp.eq.s32.totalorder %s521_s11, 0  ;;  %p51_p3 = scmp.ne.s32.totalorder %s505_s7, %s501_s6 }
   0xa   : > { %s765_s14 = smov (%p31_p0, %s29_s14), 0  ;;  %p52_p5 = scmp.eq.s32.totalorder %s326_s12, 0 }
   0xb   : > { %p580_p4 = por %p46_p2, %p45_p1  ;;  %s33_s17 = ssub.s32 %s517_s10, %s765_s14 }
   0xc   : > { %p77_p6 = scmp.eq.s32.totalorder %s326_s12, 15  ;;  %p36_p7 = scmp.eq.s32.totalorder %s33_s17, 0 }
   0xd   : > { %p586_p8 = por %p52_p5, %p51_p3  ;;  %p83_p10 = scmp.eq.s32.totalorder %s327_s13, 15 }
   0xe   : > { %p590_p9 = por %p77_p6, %p45_p1  ;;  %p359_p12 = scmp.lt.s32.totalorder %s521_s11, 16 }
   0xf   : > { %s595_s20 = scalar_select %p36_p7, %s509_s8, %s38_s15  }
  0x10   : > { %p597_p11 = por %p83_p10, %p51_p3  ;;  %s103_s22 = sand.u32 1, %s509_s8  }
  0x11   : > { %s330_s23 = sshll.u32 %s103_s22, 8  ;;  %s344_s24 = sshll.u32 %s517_s10, 12 }
  0x12   : > { %s116_s27 = scalar_lea.hbm %s752_s0, %s344_s24  ;;  %s107_s28 = scalar_lea.vmem [#allocation2], %s330_s23 }
  0x13   : > { %s117_s29 = sshll.u32 %s107_s28, 4  ;;  %p609_p13 = pnand %p359_p12, %p580_p4  ;;  %s118_s29 = int_to_ptr.vmem [resolvable:$true] %s117_s29 }
  0x14   : > { %p334_p0 = scmp.ge.s32.totalorder %s521_s11, 1  ;;  %s104_s2 = scalar_lea.sflag [#allocation3], %s103_s22 }
  0x15   : > { %p415_p1 = pneg %p609_p13  ;;  %s426_s3 = scalar_lea.vmem %s118_s29, 4096 }
  0x16   : > { %p427_p2 = scmp.ne.s32.totalorder %s118_s29, %s426_s3  ;;  %s523_s4 = smov [#allocation2]  }
  0x17   : > { %s431_s5 = sshll.u32 %s523_s4, 4  ;;  %s432_s5 = int_to_ptr.vmem [resolvable:$false] %s431_s5 }
  0x18   : > { %p429_p3 = pnand %p427_p2, %p415_p1  ;;  %s433_s12 = scalar_lea.vmem %s432_s5, 8192 }
  0x19   : > { %p434_p6 = scmp.lt.s32.totalorder %s118_s29, %s432_s5  ;;  %p435_p7 = scmp.lt.s32.totalorder %s433_s12, %s426_s3 }
  0x1a   : > { %p430_p5 = pneg %p429_p3 }
  0x1b   : > { %p436_p10 = por %p435_p7, %p434_p6 }
  0x1d   : > { %p437_p4 = pnand %p436_p10, %p430_p5 }
  0x1f   : > { %440 = shalt.err (!%p437_p4)
}
  0x20   : > { %s524_s13 = smov 256   ;;  %s525_s15 = smov 16  }
  0x21   : > { %354 = dma.hbm_to_vmem [thread:$0]  (!%p609_p13), %s116_s27, 4096, %s118_s29, %s104_s2, %s524_s13, %s524_s13, %s525_s15  }
  0x22   : > { %p125_p12 = scmp.lt.s32.totalorder %s521_s11, 17 }
  0x24   : > { %p126_p1 = pnand %p334_p0, %p125_p12 }
  0x25   : > { %s622_s16 = sand.u32 (!%p126_p1), 1, %s505_s7  }
  0x26   : > { %129 = sbr.rel (%p126_p1) target bundleno = 74 (0x4a), region = 24  ;;  %s335_s17 = sshll.u32 (!%p126_p1), %s622_s16, 8 }
  0x27   : > { %s132_s22 = scalar_lea.sflag (!%p126_p1), [#allocation3], %s622_s16  ;;  %s626_s23 = scalar_lea.vmem (!%p126_p1), [#allocation2], %s335_s17 }
  0x2b   : > { %492 = dma.done.wait (%p586_p8), %s132_s22, 4096  }
  0x2c   : > { %494 = vsyncadd (%p586_p8), %s132_s22, 4294963200  ;;  %v158_v0 = vld [vmem:[%s626_s23] sm:$0xff]  ;;  %v159_v1 = vld [vmem:[%s626_s23 + $0x8] sm:$0xff]  ;;  %s635_s24 = scalar_lea.vmem [#allocation5], %s335_s17  ;;  %s346_s18 = sshll.u32 %s513_s9, 12 }
  0x2d   : > { %v160_v2 = vld [vmem:[%s626_s23 + $0x10] sm:$0xff]  ;;  %190 = vst [vmem:[%s635_s24] sm:$0xff] %v158_v0  ;;  %191 = vst [vmem:[%s635_s24 + $0x8] sm:$0xff] %v159_v1  ;;  %v161_v3 = vld [vmem:[%s626_s23 + $0x18] sm:$0xff]  ;;  %s239_s25 = sshll.u32 %s635_s24, 4  ;;  %s690_s27 = scalar_lea.hbm %s753_s1, %s346_s18  ;;  %s692_s25 = int_to_ptr.vmem [resolvable:$true] %s239_s25 }
  0x2e   : > { %192 = vst [vmem:[%s635_s24 + $0x10] sm:$0xff] %v160_v2  ;;  %v162_v4 = vld [vmem:[%s626_s23 + $0x20] sm:$0xff]  ;;  %v163_v5 = vld [vmem:[%s626_s23 + $0x28] sm:$0xff]  ;;  %193 = vst [vmem:[%s635_s24 + $0x18] sm:$0xff] %v161_v3  ;;  %s223_s28 = scalar_lea.sflag [#allocation4], %s622_s16  ;;  %s441_s29 = scalar_lea.vmem %s692_s25, 4096 }
  0x2f   : > { %194 = vst [vmem:[%s635_s24 + $0x20] sm:$0xff] %v162_v4  ;;  %195 = vst [vmem:[%s635_s24 + $0x28] sm:$0xff] %v163_v5  ;;  %v164_v6 = vld [vmem:[%s626_s23 + $0x30] sm:$0xff]  ;;  %v165_v7 = vld [vmem:[%s626_s23 + $0x38] sm:$0xff]  ;;  %p442_p8 = scmp.ne.s32.totalorder %s692_s25, %s441_s29  ;;  %s526_s30 = smov [#allocation5]  }
  0x30   : > { %v166_v8 = vld [vmem:[%s626_s23 + $0x40] sm:$0xff]  ;;  %196 = vst [vmem:[%s635_s24 + $0x30] sm:$0xff] %v164_v6  ;;  %197 = vst [vmem:[%s635_s24 + $0x38] sm:$0xff] %v165_v7  ;;  %v167_v9 = vld [vmem:[%s626_s23 + $0x48] sm:$0xff]  ;;  %s445_s2 = sshll.u32 %s526_s30, 4  ;;  %s446_s2 = int_to_ptr.vmem [resolvable:$false] %s445_s2 }
  0x31   : > { %198 = vst [vmem:[%s635_s24 + $0x40] sm:$0xff] %v166_v8  ;;  %v168_v10 = vld [vmem:[%s626_s23 + $0x50] sm:$0xff]  ;;  %v169_v11 = vld [vmem:[%s626_s23 + $0x58] sm:$0xff]  ;;  %199 = vst [vmem:[%s635_s24 + $0x48] sm:$0xff] %v167_v9  ;;  %p443_p13 = pnand %p442_p8, %p590_p9  ;;  %s447_s3 = scalar_lea.vmem %s446_s2, 8192 }
  0x32   : > { %200 = vst [vmem:[%s635_s24 + $0x50] sm:$0xff] %v168_v10  ;;  %201 = vst [vmem:[%s635_s24 + $0x58] sm:$0xff] %v169_v11  ;;  %v170_v12 = vld [vmem:[%s626_s23 + $0x60] sm:$0xff]  ;;  %v171_v13 = vld [vmem:[%s626_s23 + $0x68] sm:$0xff]  ;;  %p448_p2 = scmp.lt.s32.totalorder %s692_s25, %s446_s2  ;;  %p449_p3 = scmp.lt.s32.totalorder %s447_s3, %s441_s29 }
  0x33   : > { %v172_v14 = vld [vmem:[%s626_s23 + $0x70] sm:$0xff]  ;;  %202 = vst [vmem:[%s635_s24 + $0x60] sm:$0xff] %v170_v12  ;;  %203 = vst [vmem:[%s635_s24 + $0x68] sm:$0xff] %v171_v13  ;;  %v173_v15 = vld [vmem:[%s626_s23 + $0x78] sm:$0xff]  ;;  %p444_p0 = pneg %p443_p13 }
  0x34   : > { %204 = vst [vmem:[%s635_s24 + $0x70] sm:$0xff] %v172_v14  ;;  %v174_v16 = vld [vmem:[%s626_s23 + $0x80] sm:$0xff]  ;;  %v175_v17 = vld [vmem:[%s626_s23 + $0x88] sm:$0xff]  ;;  %205 = vst [vmem:[%s635_s24 + $0x78] sm:$0xff] %v173_v15  ;;  %p450_p5 = por %p449_p3, %p448_p2 }
  0x35   : > { %206 = vst [vmem:[%s635_s24 + $0x80] sm:$0xff] %v174_v16  ;;  %207 = vst [vmem:[%s635_s24 + $0x88] sm:$0xff] %v175_v17  ;;  %v176_v18 = vld [vmem:[%s626_s23 + $0x90] sm:$0xff]  ;;  %v177_v19 = vld [vmem:[%s626_s23 + $0x98] sm:$0xff] }
  0x36   : > { %v178_v20 = vld [vmem:[%s626_s23 + $0xa0] sm:$0xff]  ;;  %208 = vst [vmem:[%s635_s24 + $0x90] sm:$0xff] %v176_v18  ;;  %209 = vst [vmem:[%s635_s24 + $0x98] sm:$0xff] %v177_v19  ;;  %v179_v21 = vld [vmem:[%s626_s23 + $0xa8] sm:$0xff]  ;;  %p451_p6 = pnand %p450_p5, %p444_p0 }
  0x37   : > { %210 = vst [vmem:[%s635_s24 + $0xa0] sm:$0xff] %v178_v20  ;;  %v180_v22 = vld [vmem:[%s626_s23 + $0xb0] sm:$0xff]  ;;  %v181_v23 = vld [vmem:[%s626_s23 + $0xb8] sm:$0xff]  ;;  %211 = vst [vmem:[%s635_s24 + $0xa8] sm:$0xff] %v179_v21 }
  0x38   : > { %212 = vst [vmem:[%s635_s24 + $0xb0] sm:$0xff] %v180_v22  ;;  %213 = vst [vmem:[%s635_s24 + $0xb8] sm:$0xff] %v181_v23  ;;  %v182_v24 = vld [vmem:[%s626_s23 + $0xc0] sm:$0xff]  ;;  %v183_v25 = vld [vmem:[%s626_s23 + $0xc8] sm:$0xff] }
  0x39   : > { %v184_v26 = vld [vmem:[%s626_s23 + $0xd0] sm:$0xff]  ;;  %214 = vst [vmem:[%s635_s24 + $0xc0] sm:$0xff] %v182_v24  ;;  %215 = vst [vmem:[%s635_s24 + $0xc8] sm:$0xff] %v183_v25  ;;  %v185_v27 = vld [vmem:[%s626_s23 + $0xd8] sm:$0xff] }
  0x3a   : > { %216 = vst [vmem:[%s635_s24 + $0xd0] sm:$0xff] %v184_v26  ;;  %v186_v28 = vld [vmem:[%s626_s23 + $0xe0] sm:$0xff]  ;;  %v187_v29 = vld [vmem:[%s626_s23 + $0xe8] sm:$0xff]  ;;  %217 = vst [vmem:[%s635_s24 + $0xd8] sm:$0xff] %v185_v27 }
  0x3b   : > { %218 = vst [vmem:[%s635_s24 + $0xe0] sm:$0xff] %v186_v28  ;;  %219 = vst [vmem:[%s635_s24 + $0xe8] sm:$0xff] %v187_v29  ;;  %v188_v30 = vld [vmem:[%s626_s23 + $0xf0] sm:$0xff]  ;;  %v189_v31 = vld [vmem:[%s626_s23 + $0xf8] sm:$0xff] }
  0x3c   : > { %220 = vst [vmem:[%s635_s24 + $0xf0] sm:$0xff] %v188_v30  ;;  %221 = vst [vmem:[%s635_s24 + $0xf8] sm:$0xff] %v189_v31 }
  0x3d   : > { %454 = shalt.err (!%p451_p6)
}
  0x3e   : > { %s455_s4 = scalar_lea.hbm %s690_s27, 4096  ;;  %s459_s13 = scalar_lea.hbm %s753_s1, 65536 }
  0x3f   : > { %p456_p7 = scmp.ne.s32.totalorder %s690_s27, %s455_s4  ;;  %p460_p12 = scmp.lt.s32.totalorder %s690_s27, %s753_s1 }
  0x40   : > { %p461_p1 = scmp.lt.s32.totalorder %s459_s13, %s455_s4 }
  0x41   : > { %p457_p10 = pnand %p456_p7, %p590_p9 }
  0x42   : > { %p462_p8 = por %p461_p1, %p460_p12 }
  0x43   : > { %p458_p4 = pneg %p457_p10 }
  0x45   : > { %p463_p13 = pnand %p462_p8, %p458_p4 }
  0x47   : > { %466 = shalt.err (!%p463_p13)
}
  0x48   : > { %s527_s22 = smov 256   ;;  %s528_s23 = smov 16  }
  0x49   : > { %349 = dma.vmem_to_hbm [thread:$0]  (%p590_p9), %s692_s25, 4096, %s690_s27, %s223_s28, %s527_s22, %s527_s22, %s528_s23  }
  0x4a PF: > { %p360_p0 = scmp.ge.s32.totalorder %s521_s11, 2  ;;  %s254_s24 = sand.u32 1, %s501_s6  }
  0x4b   : > { %s255_s18 = scalar_lea.sflag [#allocation4], %s254_s24 }
  0x4c   : > { %p356_p2 = pnand %p360_p0, %p597_p11 }
  0x4e   : > { %p357_p3 = pneg %p356_p2 }
  0x50   : > { %496 = dma.done.wait (%p357_p3), %s255_s18, 4096  }
  0x51   : > { %498 = vsyncadd (%p357_p3), %s255_s18, 4294963200  ;;  %s17_s11 = sadd.s32 1, %s521_s11   ;;  %s759_s6 = smov %s505_s7 }
  0x52   : > { %p14_p5 = scmp.ge.s32.totalorder %s17_s11, 18   ;;  %s760_s7 = smov %s509_s8 }
  0x53   : > { %s761_s8 = smov %s595_s20  ;;  %s762_s9 = smov %s517_s10 }
  0x54   : > { %s763_s10 = smov %s765_s14  ;;  %16 = sbr.rel (!%p14_p5) target bundleno = 6 (0x6), region = 69 }
  0x59   :  { %260 = vsyncpa [#allocation3], 1 }
  0x5a   :  { %262 = vsyncpa [#allocation3 + $0x1], 1 }
  0x5b   :  { %263 = vsyncpa [#allocation4], 1 }
  0x5c   :  { %265 = vsyncpa [#allocation4 + $0x1], 1 }

</bundles_post_ra>
